<compile_context>
chip_gen: v6e
topology: v6e:2x2x1
jax: 0.10.0
libtpu: 0.0.40
codegen_flags: <defaults>
</compile_context>

<pallas_src>
import jax
import jax.numpy as jnp
import numpy as np
from jax.experimental import pallas as pl
from jax.experimental.pallas import tpu as pltpu


def fused_lstm2_wavefront_kernel(x_ref, wih_aug_ref, wcomb_ref, b_aug_ref,
                                 out_ref, add_sc):
    """Fused, wavefronted 2-layer LSTM forward.

    x_ref       : (seq*BP, in)  time-major flattened input (row t*BP+b = time t)
    wih_aug_ref : (in, 8H)      layer-1 input weights scattered into the
                                combined gate layout (layer-2 columns are 0)
    wcomb_ref   : (2H, 8H)      [[Whh1, Wih2],[0, Whh2]] in combined layout
    b_aug_ref   : (1, 8H)       merged biases of both layers, combined layout
    out_ref     : (BP, 4H)      packed final states [h1 | h2 | c1 | c2]
    add_sc      : (seq*BP, 8H)  precomputed additive term per timestep

    Combined gate column layout: [i1, i2, f1, f2, o1, o2, g1, g2] so one
    sigmoid covers columns [0:6H] and one tanh covers [6H:8H].
    """
    BP = out_ref.shape[0]
    H = out_ref.shape[1] // 4
    H2 = 2 * H
    seq = x_ref.shape[0] // BP

    # ---- off the serial path: all input projections + both biases, 1 matmul.
    add_sc[...] = (jnp.dot(x_ref[...], wih_aug_ref[...],
                           preferred_element_type=jnp.float32)
                   + b_aug_ref[...])

    # Hoist the recurrent weight load and the layer mask out of the wave loop.
    wcomb = wcomb_ref[...]
    lane = jax.lax.broadcasted_iota(jnp.int32, (BP, H2), 1)
    is_l1 = lane < H  # True on the layer-1 half of the packed state

    # Loop-carried state lives in vregs: [h1 | h2] and [c1 | c2].
    h12 = jnp.zeros((BP, H2), jnp.float32)
    c12 = jnp.zeros((BP, H2), jnp.float32)

    # Wave w computes layer-1 time w and layer-2 time w-1.  Fully unrolled:
    # seq is small and static.
    for w in range(seq + 1):
        t = min(w, seq - 1)  # clamp: layer-1 half of the last wave is discarded
        add_w = add_sc[pl.ds(t * BP, BP), :]
        gates = jnp.dot(h12, wcomb, preferred_element_type=jnp.float32) + add_w

        sig = jax.nn.sigmoid(gates[:, 0:3 * H2])      # [i1,i2,f1,f2,o1,o2]
        g12 = jnp.tanh(gates[:, 3 * H2:4 * H2])       # [g1,g2]
        i12 = sig[:, 0:H2]
        f12 = sig[:, H2:2 * H2]
        o12 = sig[:, 2 * H2:3 * H2]

        c_new = f12 * c12 + i12 * g12
        h_new = o12 * jnp.tanh(c_new)

        if w == 0:
            # Layer-2 has not started yet: keep its half at zero.
            h_new = jnp.where(is_l1, h_new, 0.0)
            c_new = jnp.where(is_l1, c_new, 0.0)
        if w == seq:
            # Layer-1 half of this wave is out of range: keep its final state.
            h_new = jnp.where(is_l1, h12, h_new)
            c_new = jnp.where(is_l1, c12, c_new)

        h12 = h_new
        c12 = c_new

    # One lane-dense unmasked store: [h1 | h2 | c1 | c2].
    out_ref[...] = jnp.concatenate([h12, c12], axis=1)


def prepare_lstm_params(params):
    """One-time weight prep: transpose, gate-permute, merge biases, and build
    the fused wavefront matrices.

    params: list of 2 tuples (w_ih, w_hh, b_ih, b_hh) in PyTorch shapes
            (gate row order i, f, g, o).
    Returns (wih_aug (in,8H), w_comb (2H,8H), b_aug (1,8H)).
    Combined gate column layout: [i1, i2, f1, f2, o1, o2, g1, g2].
    """
    assert len(params) == 2, "kernel is specialized for num_layers=2"
    (w_ih1, w_hh1, b_ih1, b_hh1), (w_ih2, w_hh2, b_ih2, b_hh2) = params
    H = w_hh1.shape[1]
    in_sz = w_ih1.shape[1]

    def gate_blocks(w):  # w: (4H, X) torch layout -> transposed (X, H) blocks i,f,g,o
        wt = jnp.asarray(w, jnp.float32).T
        return wt[:, 0:H], wt[:, H:2 * H], wt[:, 2 * H:3 * H], wt[:, 3 * H:4 * H]

    i1x, f1x, g1x, o1x = gate_blocks(w_ih1)   # x -> layer-1 gates
    i1h, f1h, g1h, o1h = gate_blocks(w_hh1)   # h1 -> layer-1 gates
    i2x, f2x, g2x, o2x = gate_blocks(w_ih2)   # h1 -> layer-2 gates (layer-2 input)
    i2h, f2h, g2h, o2h = gate_blocks(w_hh2)   # h2 -> layer-2 gates

    z_in = jnp.zeros((in_sz, H), jnp.float32)
    z_h = jnp.zeros((H, H), jnp.float32)

    # x projects only into layer-1 gate columns.
    wih_aug = jnp.concatenate(
        [i1x, z_in, f1x, z_in, o1x, z_in, g1x, z_in], axis=1)        # (in, 8H)

    # Combined recurrent weight: rows 0:H multiply h1_{w-1}, rows H:2H h2_{w-2}.
    top = jnp.concatenate([i1h, i2x, f1h, f2x, o1h, o2x, g1h, g2x], axis=1)
    bot = jnp.concatenate([z_h, i2h, z_h, f2h, z_h, o2h, z_h, g2h], axis=1)
    w_comb = jnp.concatenate([top, bot], axis=0)                      # (2H, 8H)

    b1 = jnp.asarray(b_ih1 + b_hh1, jnp.float32)
    b2 = jnp.asarray(b_ih2 + b_hh2, jnp.float32)

    def bias_blocks(b):
        return b[0:H], b[H:2 * H], b[2 * H:3 * H], b[3 * H:4 * H]

    i1b, f1b, g1b, o1b = bias_blocks(b1)
    i2b, f2b, g2b, o2b = bias_blocks(b2)
    b_aug = jnp.concatenate(
        [i1b, i2b, f1b, f2b, o1b, o2b, g1b, g2b])[None, :]            # (1, 8H)

    return wih_aug, w_comb, b_aug


def simple_lstm_forward(x, prep):
    """Equivalent of SimpleLSTM.forward: returns (h_n, c_n).

    x   : (batch, seq, input_size)  -- batch_first=True
    prep: output of prepare_lstm_params.
    Returns h_n, c_n of shape (2, batch, hidden).
    """
    wih_aug, w_comb, b_aug = prep
    batch, seq, in_sz = x.shape
    H = w_comb.shape[0] // 2

    # Pad batch to a sublane multiple so vreg loads/stores are unmasked.
    BP = ((batch + 7) // 8) * 8
    x_tm = jnp.transpose(x, (1, 0, 2)).astype(jnp.float32)   # (seq, batch, in)
    if BP != batch:
        x_tm = jnp.pad(x_tm, ((0, 0), (0, BP - batch), (0, 0)))
    x_flat = x_tm.reshape(seq * BP, in_sz)                    # (seq*BP, in)

    vmem = pl.BlockSpec(memory_space=pltpu.MemorySpace.VMEM)
    out = pl.pallas_call(
        fused_lstm2_wavefront_kernel,
        out_shape=jax.ShapeDtypeStruct((BP, 4 * H), jnp.float32),
        in_specs=[vmem] * 4,
        out_specs=vmem,
        scratch_shapes=[
            pltpu.VMEM((seq * BP, 8 * H), jnp.float32),   # add_sc
        ],
        # Explicit VMEM budget (scratch scales as seq*BP*8H*4B at large sizes).
        compiler_params=pltpu.CompilerParams(vmem_limit_bytes=32 * 1024 * 1024),
    )(x_flat, wih_aug, w_comb, b_aug)

    # Packed layout: [h1 | h2 | c1 | c2].
    h_n = jnp.stack([out[:batch, 0:H], out[:batch, H:2 * H]], axis=0)
    c_n = jnp.stack([out[:batch, 2 * H:3 * H], out[:batch, 3 * H:4 * H]], axis=0)
    return h_n, c_n


def reference_lstm(x, params):
    """Pure-JAX reference identical to PyTorch nn.LSTM forward (for checking)."""
    x_tm = jnp.transpose(x, (1, 0, 2))
    hs, cs = [], []
    layer_in = x_tm
    for (w_ih, w_hh, b_ih, b_hh) in params:
        H = w_hh.shape[1]
        h = jnp.zeros((x.shape[0], H), jnp.float32)
        c = jnp.zeros((x.shape[0], H), jnp.float32)
        ys = []
        for t in range(layer_in.shape[0]):
            gates = layer_in[t] @ w_ih.T + h @ w_hh.T + b_ih + b_hh
            i = jax.nn.sigmoid(gates[:, 0:H])
            f = jax.nn.sigmoid(gates[:, H:2 * H])
            g = jnp.tanh(gates[:, 2 * H:3 * H])
            o = jax.nn.sigmoid(gates[:, 3 * H:4 * H])
            c = f * c + i * g
            h = o * jnp.tanh(c)
            ys.append(h)
        hs.append(h)
        cs.append(c)
        layer_in = jnp.stack(ys, axis=0)
    return jnp.stack(hs, axis=0), jnp.stack(cs, axis=0)


def init_lstm_params(key, input_size, hidden_size, num_layers):
    """Deterministic init matching PyTorch shapes: uniform(-1/sqrt(H), 1/sqrt(H))."""
    k = 1.0 / np.sqrt(hidden_size)
    params = []
    in_sz = input_size
    for _ in range(num_layers):
        key, k1, k2, k3, k4 = jax.random.split(key, 5)
        w_ih = jax.random.uniform(k1, (4 * hidden_size, in_sz), jnp.float32, -k, k)
        w_hh = jax.random.uniform(k2, (4 * hidden_size, hidden_size), jnp.float32, -k, k)
        b_ih = jax.random.uniform(k3, (4 * hidden_size,), jnp.float32, -k, k)
        b_hh = jax.random.uniform(k4, (4 * hidden_size,), jnp.float32, -k, k)
        params.append((w_ih, w_hh, b_ih, b_hh))
        in_sz = hidden_size
    return params


if __name__ == "__main__":
    batch, seq, input_size, hidden_size, num_layers = 2, 8, 16, 32, 2

    key = jax.random.PRNGKey(0)
    key, xkey = jax.random.split(key)
    x = 0.1 * jax.random.uniform(xkey, (batch, seq, input_size), jnp.float32)

    params = init_lstm_params(key, input_size, hidden_size, num_layers)
    prep = prepare_lstm_params(params)   # done once, not per forward

    h_n, c_n = simple_lstm_forward(x, prep)
    h_n = jax.block_until_ready(h_n)
    c_n = jax.block_until_ready(c_n)

    assert h_n.shape == (num_layers, batch, hidden_size)
    assert c_n.shape == (num_layers, batch, hidden_size)

    h_ref, c_ref = reference_lstm(x, params)
    np.testing.assert_allclose(np.asarray(h_n), np.asarray(h_ref), rtol=1e-5, atol=1e-5)
    np.testing.assert_allclose(np.asarray(c_n), np.asarray(c_ref), rtol=1e-5, atol=1e-5)

    print("KERNEL_OK")
</pallas_src>

<mosaic_0001>
module attributes {stable_mosaic.version = 11 : i64} {
  func.func @fused_lstm2_wavefront_kernel(%arg0: memref<64x16xf32, #tpu.memory_space<vmem>>, %arg1: memref<16x256xf32, #tpu.memory_space<vmem>>, %arg2: memref<64x256xf32, #tpu.memory_space<vmem>>, %arg3: memref<1x256xf32, #tpu.memory_space<vmem>>, %arg4: memref<8x128xf32, #tpu.memory_space<vmem>>, %arg5: memref<64x256xf32, #tpu.memory_space<vmem>>) attributes {dimension_semantics = [], scalar_prefetch = 0 : i64, scratch_operands = 1 : i64, tpu.core_type = #tpu.core_type<tc>} {
    %c0 = arith.constant 0 : index
    %c0_0 = arith.constant 0 : index
    %0 = vector.load %arg0[%c0, %c0_0] : memref<64x16xf32, #tpu.memory_space<vmem>>, vector<64x16xf32>
    %c0_1 = arith.constant 0 : index
    %c0_2 = arith.constant 0 : index
    %1 = vector.load %arg1[%c0_1, %c0_2] : memref<16x256xf32, #tpu.memory_space<vmem>>, vector<16x256xf32>
    %cst = arith.constant dense<0.000000e+00> : vector<64x256xf32>
    %2 = tpu.matmul %0, %1, %cst {dimension_numbers = #tpu.dot_dimension_numbers<[1], [0], [0], [1], [0, 0, 1, 1], [], []>} : vector<64x16xf32>, vector<16x256xf32>, vector<64x256xf32> -> vector<64x256xf32>
    %c0_3 = arith.constant 0 : index
    %c0_4 = arith.constant 0 : index
    %3 = vector.load %arg3[%c0_3, %c0_4] : memref<1x256xf32, #tpu.memory_space<vmem>>, vector<1x256xf32>
    %4 = vector.broadcast %3 : vector<1x256xf32> to vector<64x256xf32>
    %5 = arith.addf %2, %4 : vector<64x256xf32>
    %c0_5 = arith.constant 0 : index
    %c0_6 = arith.constant 0 : index
    %6 = vector.load %arg5[%c0_5, %c0_6] : memref<64x256xf32, #tpu.memory_space<vmem>>, vector<64x256xf32>
    tpu.vector_store %arg5[%c0_5, %c0_6], %5 {strides = array<i32>} : memref<64x256xf32, #tpu.memory_space<vmem>>, vector<64x256xf32>,
    %c0_7 = arith.constant 0 : index
    %c0_8 = arith.constant 0 : index
    %7 = vector.load %arg2[%c0_7, %c0_8] : memref<64x256xf32, #tpu.memory_space<vmem>>, vector<64x256xf32>
    %8 = tpu.iota {dimensions = array<i32: 1>} : vector<8x64xi32>
    %c32_i32 = arith.constant 32 : i32
    %9 = vector.broadcast %c32_i32 : i32 to vector<8x64xi32>
    %10 = arith.cmpi slt, %8, %9 : vector<8x64xi32>
    %cst_9 = arith.constant 0.000000e+00 : f32
    %11 = vector.broadcast %cst_9 : f32 to vector<8x64xf32>
    %cst_10 = arith.constant 0.000000e+00 : f32
    %12 = vector.broadcast %cst_10 : f32 to vector<8x64xf32>
    %c0_11 = arith.constant 0 : index
    %c0_12 = arith.constant 0 : index
    %13 = vector.load %arg5[%c0_11, %c0_12] : memref<64x256xf32, #tpu.memory_space<vmem>>, vector<8x256xf32>
    %cst_13 = arith.constant dense<0.000000e+00> : vector<8x256xf32>
    %14 = tpu.matmul %11, %7, %cst_13 {dimension_numbers = #tpu.dot_dimension_numbers<[1], [0], [0], [1], [0, 0, 1, 1], [], []>} : vector<8x64xf32>, vector<64x256xf32>, vector<8x256xf32> -> vector<8x256xf32>
    %15 = arith.addf %14, %13 : vector<8x256xf32>
    %16 = vector.extract_strided_slice %15 {offsets = [0, 0], sizes = [8, 192], strides = [1, 1]} : vector<8x256xf32> to vector<8x192xf32>
    %17 = arith.negf %16 : vector<8x192xf32>
    %18 = math.exp %17 : vector<8x192xf32>
    %cst_14 = arith.constant 1.000000e+00 : f32
    %19 = vector.broadcast %cst_14 : f32 to vector<8x192xf32>
    %20 = arith.addf %19, %18 : vector<8x192xf32>
    %21 = arith.divf %19, %20 : vector<8x192xf32>
    %22 = vector.extract_strided_slice %15 {offsets = [0, 192], sizes = [8, 64], strides = [1, 1]} : vector<8x256xf32> to vector<8x64xf32>
    %23 = math.tanh %22 : vector<8x64xf32>
    %24 = vector.extract_strided_slice %21 {offsets = [0, 0], sizes = [8, 64], strides = [1, 1]} : vector<8x192xf32> to vector<8x64xf32>
    %25 = vector.extract_strided_slice %21 {offsets = [0, 64], sizes = [8, 64], strides = [1, 1]} : vector<8x192xf32> to vector<8x64xf32>
    %26 = vector.extract_strided_slice %21 {offsets = [0, 128], sizes = [8, 64], strides = [1, 1]} : vector<8x192xf32> to vector<8x64xf32>
    %27 = arith.mulf %25, %12 : vector<8x64xf32>
    %28 = arith.mulf %24, %23 : vector<8x64xf32>
    %29 = arith.addf %27, %28 : vector<8x64xf32>
    %30 = math.tanh %29 : vector<8x64xf32>
    %31 = arith.mulf %26, %30 : vector<8x64xf32>
    %cst_15 = arith.constant 0.000000e+00 : f32
    %32 = vector.broadcast %cst_15 : f32 to vector<8x64xf32>
    %33 = arith.select %10, %31, %32 : vector<8x64xi1>, vector<8x64xf32>
    %cst_16 = arith.constant 0.000000e+00 : f32
    %34 = vector.broadcast %cst_16 : f32 to vector<8x64xf32>
    %35 = arith.select %10, %29, %34 : vector<8x64xi1>, vector<8x64xf32>
    %c8 = arith.constant 8 : index
    %c0_17 = arith.constant 0 : index
    %36 = vector.load %arg5[%c8, %c0_17] : memref<64x256xf32, #tpu.memory_space<vmem>>, vector<8x256xf32>
    %cst_18 = arith.constant dense<0.000000e+00> : vector<8x256xf32>
    %37 = tpu.matmul %33, %7, %cst_18 {dimension_numbers = #tpu.dot_dimension_numbers<[1], [0], [0], [1], [0, 0, 1, 1], [], []>} : vector<8x64xf32>, vector<64x256xf32>, vector<8x256xf32> -> vector<8x256xf32>
    %38 = arith.addf %37, %36 : vector<8x256xf32>
    %39 = vector.extract_strided_slice %38 {offsets = [0, 0], sizes = [8, 192], strides = [1, 1]} : vector<8x256xf32> to vector<8x192xf32>
    %40 = arith.negf %39 : vector<8x192xf32>
    %41 = math.exp %40 : vector<8x192xf32>
    %cst_19 = arith.constant 1.000000e+00 : f32
    %42 = vector.broadcast %cst_19 : f32 to vector<8x192xf32>
    %43 = arith.addf %42, %41 : vector<8x192xf32>
    %44 = arith.divf %42, %43 : vector<8x192xf32>
    %45 = vector.extract_strided_slice %38 {offsets = [0, 192], sizes = [8, 64], strides = [1, 1]} : vector<8x256xf32> to vector<8x64xf32>
    %46 = math.tanh %45 : vector<8x64xf32>
    %47 = vector.extract_strided_slice %44 {offsets = [0, 0], sizes = [8, 64], strides = [1, 1]} : vector<8x192xf32> to vector<8x64xf32>
    %48 = vector.extract_strided_slice %44 {offsets = [0, 64], sizes = [8, 64], strides = [1, 1]} : vector<8x192xf32> to vector<8x64xf32>
    %49 = vector.extract_strided_slice %44 {offsets = [0, 128], sizes = [8, 64], strides = [1, 1]} : vector<8x192xf32> to vector<8x64xf32>
    %50 = arith.mulf %48, %35 : vector<8x64xf32>
    %51 = arith.mulf %47, %46 : vector<8x64xf32>
    %52 = arith.addf %50, %51 : vector<8x64xf32>
    %53 = math.tanh %52 : vector<8x64xf32>
    %54 = arith.mulf %49, %53 : vector<8x64xf32>
    %c16 = arith.constant 16 : index
    %c0_20 = arith.constant 0 : index
    %55 = vector.load %arg5[%c16, %c0_20] : memref<64x256xf32, #tpu.memory_space<vmem>>, vector<8x256xf32>
    %cst_21 = arith.constant dense<0.000000e+00> : vector<8x256xf32>
    %56 = tpu.matmul %54, %7, %cst_21 {dimension_numbers = #tpu.dot_dimension_numbers<[1], [0], [0], [1], [0, 0, 1, 1], [], []>} : vector<8x64xf32>, vector<64x256xf32>, vector<8x256xf32> -> vector<8x256xf32>
    %57 = arith.addf %56, %55 : vector<8x256xf32>
    %58 = vector.extract_strided_slice %57 {offsets = [0, 0], sizes = [8, 192], strides = [1, 1]} : vector<8x256xf32> to vector<8x192xf32>
    %59 = arith.negf %58 : vector<8x192xf32>
    %60 = math.exp %59 : vector<8x192xf32>
    %cst_22 = arith.constant 1.000000e+00 : f32
    %61 = vector.broadcast %cst_22 : f32 to vector<8x192xf32>
    %62 = arith.addf %61, %60 : vector<8x192xf32>
    %63 = arith.divf %61, %62 : vector<8x192xf32>
    %64 = vector.extract_strided_slice %57 {offsets = [0, 192], sizes = [8, 64], strides = [1, 1]} : vector<8x256xf32> to vector<8x64xf32>
    %65 = math.tanh %64 : vector<8x64xf32>
    %66 = vector.extract_strided_slice %63 {offsets = [0, 0], sizes = [8, 64], strides = [1, 1]} : vector<8x192xf32> to vector<8x64xf32>
    %67 = vector.extract_strided_slice %63 {offsets = [0, 64], sizes = [8, 64], strides = [1, 1]} : vector<8x192xf32> to vector<8x64xf32>
    %68 = vector.extract_strided_slice %63 {offsets = [0, 128], sizes = [8, 64], strides = [1, 1]} : vector<8x192xf32> to vector<8x64xf32>
    %69 = arith.mulf %67, %52 : vector<8x64xf32>
    %70 = arith.mulf %66, %65 : vector<8x64xf32>
    %71 = arith.addf %69, %70 : vector<8x64xf32>
    %72 = math.tanh %71 : vector<8x64xf32>
    %73 = arith.mulf %68, %72 : vector<8x64xf32>
    %c24 = arith.constant 24 : index
    %c0_23 = arith.constant 0 : index
    %74 = vector.load %arg5[%c24, %c0_23] : memref<64x256xf32, #tpu.memory_space<vmem>>, vector<8x256xf32>
    %cst_24 = arith.constant dense<0.000000e+00> : vector<8x256xf32>
    %75 = tpu.matmul %73, %7, %cst_24 {dimension_numbers = #tpu.dot_dimension_numbers<[1], [0], [0], [1], [0, 0, 1, 1], [], []>} : vector<8x64xf32>, vector<64x256xf32>, vector<8x256xf32> -> vector<8x256xf32>
    %76 = arith.addf %75, %74 : vector<8x256xf32>
    %77 = vector.extract_strided_slice %76 {offsets = [0, 0], sizes = [8, 192], strides = [1, 1]} : vector<8x256xf32> to vector<8x192xf32>
    %78 = arith.negf %77 : vector<8x192xf32>
    %79 = math.exp %78 : vector<8x192xf32>
    %cst_25 = arith.constant 1.000000e+00 : f32
    %80 = vector.broadcast %cst_25 : f32 to vector<8x192xf32>
    %81 = arith.addf %80, %79 : vector<8x192xf32>
    %82 = arith.divf %80, %81 : vector<8x192xf32>
    %83 = vector.extract_strided_slice %76 {offsets = [0, 192], sizes = [8, 64], strides = [1, 1]} : vector<8x256xf32> to vector<8x64xf32>
    %84 = math.tanh %83 : vector<8x64xf32>
    %85 = vector.extract_strided_slice %82 {offsets = [0, 0], sizes = [8, 64], strides = [1, 1]} : vector<8x192xf32> to vector<8x64xf32>
    %86 = vector.extract_strided_slice %82 {offsets = [0, 64], sizes = [8, 64], strides = [1, 1]} : vector<8x192xf32> to vector<8x64xf32>
    %87 = vector.extract_strided_slice %82 {offsets = [0, 128], sizes = [8, 64], strides = [1, 1]} : vector<8x192xf32> to vector<8x64xf32>
    %88 = arith.mulf %86, %71 : vector<8x64xf32>
    %89 = arith.mulf %85, %84 : vector<8x64xf32>
    %90 = arith.addf %88, %89 : vector<8x64xf32>
    %91 = math.tanh %90 : vector<8x64xf32>
    %92 = arith.mulf %87, %91 : vector<8x64xf32>
    %c32 = arith.constant 32 : index
    %c0_26 = arith.constant 0 : index
    %93 = vector.load %arg5[%c32, %c0_26] : memref<64x256xf32, #tpu.memory_space<vmem>>, vector<8x256xf32>
    %cst_27 = arith.constant dense<0.000000e+00> : vector<8x256xf32>
    %94 = tpu.matmul %92, %7, %cst_27 {dimension_numbers = #tpu.dot_dimension_numbers<[1], [0], [0], [1], [0, 0, 1, 1], [], []>} : vector<8x64xf32>, vector<64x256xf32>, vector<8x256xf32> -> vector<8x256xf32>
    %95 = arith.addf %94, %93 : vector<8x256xf32>
    %96 = vector.extract_strided_slice %95 {offsets = [0, 0], sizes = [8, 192], strides = [1, 1]} : vector<8x256xf32> to vector<8x192xf32>
    %97 = arith.negf %96 : vector<8x192xf32>
    %98 = math.exp %97 : vector<8x192xf32>
    %cst_28 = arith.constant 1.000000e+00 : f32
    %99 = vector.broadcast %cst_28 : f32 to vector<8x192xf32>
    %100 = arith.addf %99, %98 : vector<8x192xf32>
    %101 = arith.divf %99, %100 : vector<8x192xf32>
    %102 = vector.extract_strided_slice %95 {offsets = [0, 192], sizes = [8, 64], strides = [1, 1]} : vector<8x256xf32> to vector<8x64xf32>
    %103 = math.tanh %102 : vector<8x64xf32>
    %104 = vector.extract_strided_slice %101 {offsets = [0, 0], sizes = [8, 64], strides = [1, 1]} : vector<8x192xf32> to vector<8x64xf32>
    %105 = vector.extract_strided_slice %101 {offsets = [0, 64], sizes = [8, 64], strides = [1, 1]} : vector<8x192xf32> to vector<8x64xf32>
    %106 = vector.extract_strided_slice %101 {offsets = [0, 128], sizes = [8, 64], strides = [1, 1]} : vector<8x192xf32> to vector<8x64xf32>
    %107 = arith.mulf %105, %90 : vector<8x64xf32>
    %108 = arith.mulf %104, %103 : vector<8x64xf32>
    %109 = arith.addf %107, %108 : vector<8x64xf32>
    %110 = math.tanh %109 : vector<8x64xf32>
    %111 = arith.mulf %106, %110 : vector<8x64xf32>
    %c40 = arith.constant 40 : index
    %c0_29 = arith.constant 0 : index
    %112 = vector.load %arg5[%c40, %c0_29] : memref<64x256xf32, #tpu.memory_space<vmem>>, vector<8x256xf32>
    %cst_30 = arith.constant dense<0.000000e+00> : vector<8x256xf32>
    %113 = tpu.matmul %111, %7, %cst_30 {dimension_numbers = #tpu.dot_dimension_numbers<[1], [0], [0], [1], [0, 0, 1, 1], [], []>} : vector<8x64xf32>, vector<64x256xf32>, vector<8x256xf32> -> vector<8x256xf32>
    %114 = arith.addf %113, %112 : vector<8x256xf32>
    %115 = vector.extract_strided_slice %114 {offsets = [0, 0], sizes = [8, 192], strides = [1, 1]} : vector<8x256xf32> to vector<8x192xf32>
    %116 = arith.negf %115 : vector<8x192xf32>
    %117 = math.exp %116 : vector<8x192xf32>
    %cst_31 = arith.constant 1.000000e+00 : f32
    %118 = vector.broadcast %cst_31 : f32 to vector<8x192xf32>
    %119 = arith.addf %118, %117 : vector<8x192xf32>
    %120 = arith.divf %118, %119 : vector<8x192xf32>
    %121 = vector.extract_strided_slice %114 {offsets = [0, 192], sizes = [8, 64], strides = [1, 1]} : vector<8x256xf32> to vector<8x64xf32>
    %122 = math.tanh %121 : vector<8x64xf32>
    %123 = vector.extract_strided_slice %120 {offsets = [0, 0], sizes = [8, 64], strides = [1, 1]} : vector<8x192xf32> to vector<8x64xf32>
    %124 = vector.extract_strided_slice %120 {offsets = [0, 64], sizes = [8, 64], strides = [1, 1]} : vector<8x192xf32> to vector<8x64xf32>
    %125 = vector.extract_strided_slice %120 {offsets = [0, 128], sizes = [8, 64], strides = [1, 1]} : vector<8x192xf32> to vector<8x64xf32>
    %126 = arith.mulf %124, %109 : vector<8x64xf32>
    %127 = arith.mulf %123, %122 : vector<8x64xf32>
    %128 = arith.addf %126, %127 : vector<8x64xf32>
    %129 = math.tanh %128 : vector<8x64xf32>
    %130 = arith.mulf %125, %129 : vector<8x64xf32>
    %c48 = arith.constant 48 : index
    %c0_32 = arith.constant 0 : index
    %131 = vector.load %arg5[%c48, %c0_32] : memref<64x256xf32, #tpu.memory_space<vmem>>, vector<8x256xf32>
    %cst_33 = arith.constant dense<0.000000e+00> : vector<8x256xf32>
    %132 = tpu.matmul %130, %7, %cst_33 {dimension_numbers = #tpu.dot_dimension_numbers<[1], [0], [0], [1], [0, 0, 1, 1], [], []>} : vector<8x64xf32>, vector<64x256xf32>, vector<8x256xf32> -> vector<8x256xf32>
    %133 = arith.addf %132, %131 : vector<8x256xf32>
    %134 = vector.extract_strided_slice %133 {offsets = [0, 0], sizes = [8, 192], strides = [1, 1]} : vector<8x256xf32> to vector<8x192xf32>
    %135 = arith.negf %134 : vector<8x192xf32>
    %136 = math.exp %135 : vector<8x192xf32>
    %cst_34 = arith.constant 1.000000e+00 : f32
    %137 = vector.broadcast %cst_34 : f32 to vector<8x192xf32>
    %138 = arith.addf %137, %136 : vector<8x192xf32>
    %139 = arith.divf %137, %138 : vector<8x192xf32>
    %140 = vector.extract_strided_slice %133 {offsets = [0, 192], sizes = [8, 64], strides = [1, 1]} : vector<8x256xf32> to vector<8x64xf32>
    %141 = math.tanh %140 : vector<8x64xf32>
    %142 = vector.extract_strided_slice %139 {offsets = [0, 0], sizes = [8, 64], strides = [1, 1]} : vector<8x192xf32> to vector<8x64xf32>
    %143 = vector.extract_strided_slice %139 {offsets = [0, 64], sizes = [8, 64], strides = [1, 1]} : vector<8x192xf32> to vector<8x64xf32>
    %144 = vector.extract_strided_slice %139 {offsets = [0, 128], sizes = [8, 64], strides = [1, 1]} : vector<8x192xf32> to vector<8x64xf32>
    %145 = arith.mulf %143, %128 : vector<8x64xf32>
    %146 = arith.mulf %142, %141 : vector<8x64xf32>
    %147 = arith.addf %145, %146 : vector<8x64xf32>
    %148 = math.tanh %147 : vector<8x64xf32>
    %149 = arith.mulf %144, %148 : vector<8x64xf32>
    %c56 = arith.constant 56 : index
    %c0_35 = arith.constant 0 : index
    %150 = vector.load %arg5[%c56, %c0_35] : memref<64x256xf32, #tpu.memory_space<vmem>>, vector<8x256xf32>
    %cst_36 = arith.constant dense<0.000000e+00> : vector<8x256xf32>
    %151 = tpu.matmul %149, %7, %cst_36 {dimension_numbers = #tpu.dot_dimension_numbers<[1], [0], [0], [1], [0, 0, 1, 1], [], []>} : vector<8x64xf32>, vector<64x256xf32>, vector<8x256xf32> -> vector<8x256xf32>
    %152 = arith.addf %151, %150 : vector<8x256xf32>
    %153 = vector.extract_strided_slice %152 {offsets = [0, 0], sizes = [8, 192], strides = [1, 1]} : vector<8x256xf32> to vector<8x192xf32>
    %154 = arith.negf %153 : vector<8x192xf32>
    %155 = math.exp %154 : vector<8x192xf32>
    %cst_37 = arith.constant 1.000000e+00 : f32
    %156 = vector.broadcast %cst_37 : f32 to vector<8x192xf32>
    %157 = arith.addf %156, %155 : vector<8x192xf32>
    %158 = arith.divf %156, %157 : vector<8x192xf32>
    %159 = vector.extract_strided_slice %152 {offsets = [0, 192], sizes = [8, 64], strides = [1, 1]} : vector<8x256xf32> to vector<8x64xf32>
    %160 = math.tanh %159 : vector<8x64xf32>
    %161 = vector.extract_strided_slice %158 {offsets = [0, 0], sizes = [8, 64], strides = [1, 1]} : vector<8x192xf32> to vector<8x64xf32>
    %162 = vector.extract_strided_slice %158 {offsets = [0, 64], sizes = [8, 64], strides = [1, 1]} : vector<8x192xf32> to vector<8x64xf32>
    %163 = vector.extract_strided_slice %158 {offsets = [0, 128], sizes = [8, 64], strides = [1, 1]} : vector<8x192xf32> to vector<8x64xf32>
    %164 = arith.mulf %162, %147 : vector<8x64xf32>
    %165 = arith.mulf %161, %160 : vector<8x64xf32>
    %166 = arith.addf %164, %165 : vector<8x64xf32>
    %167 = math.tanh %166 : vector<8x64xf32>
    %168 = arith.mulf %163, %167 : vector<8x64xf32>
    %c56_38 = arith.constant 56 : index
    %c0_39 = arith.constant 0 : index
    %169 = vector.load %arg5[%c56_38, %c0_39] : memref<64x256xf32, #tpu.memory_space<vmem>>, vector<8x256xf32>
    %cst_40 = arith.constant dense<0.000000e+00> : vector<8x256xf32>
    %170 = tpu.matmul %168, %7, %cst_40 {dimension_numbers = #tpu.dot_dimension_numbers<[1], [0], [0], [1], [0, 0, 1, 1], [], []>} : vector<8x64xf32>, vector<64x256xf32>, vector<8x256xf32> -> vector<8x256xf32>
    %171 = arith.addf %170, %169 : vector<8x256xf32>
    %172 = vector.extract_strided_slice %171 {offsets = [0, 0], sizes = [8, 192], strides = [1, 1]} : vector<8x256xf32> to vector<8x192xf32>
    %173 = arith.negf %172 : vector<8x192xf32>
    %174 = math.exp %173 : vector<8x192xf32>
    %cst_41 = arith.constant 1.000000e+00 : f32
    %175 = vector.broadcast %cst_41 : f32 to vector<8x192xf32>
    %176 = arith.addf %175, %174 : vector<8x192xf32>
    %177 = arith.divf %175, %176 : vector<8x192xf32>
    %178 = vector.extract_strided_slice %171 {offsets = [0, 192], sizes = [8, 64], strides = [1, 1]} : vector<8x256xf32> to vector<8x64xf32>
    %179 = math.tanh %178 : vector<8x64xf32>
    %180 = vector.extract_strided_slice %177 {offsets = [0, 0], sizes = [8, 64], strides = [1, 1]} : vector<8x192xf32> to vector<8x64xf32>
    %181 = vector.extract_strided_slice %177 {offsets = [0, 64], sizes = [8, 64], strides = [1, 1]} : vector<8x192xf32> to vector<8x64xf32>
    %182 = vector.extract_strided_slice %177 {offsets = [0, 128], sizes = [8, 64], strides = [1, 1]} : vector<8x192xf32> to vector<8x64xf32>
    %183 = arith.mulf %181, %166 : vector<8x64xf32>
    %184 = arith.mulf %180, %179 : vector<8x64xf32>
    %185 = arith.addf %183, %184 : vector<8x64xf32>
    %186 = math.tanh %185 : vector<8x64xf32>
    %187 = arith.mulf %182, %186 : vector<8x64xf32>
    %188 = arith.select %10, %168, %187 : vector<8x64xi1>, vector<8x64xf32>
    %189 = arith.select %10, %166, %185 : vector<8x64xi1>, vector<8x64xf32>
    %190 = tpu.concatenate %188, %189 in 1 : vector<8x64xf32>, vector<8x64xf32> -> vector<8x128xf32>
    %c0_42 = arith.constant 0 : index
    %c0_43 = arith.constant 0 : index
    %191 = vector.load %arg4[%c0_42, %c0_43] : memref<8x128xf32, #tpu.memory_space<vmem>>, vector<8x128xf32>
    tpu.vector_store %arg4[%c0_42, %c0_43], %190 {strides = array<i32>} : memref<8x128xf32, #tpu.memory_space<vmem>>, vector<8x128xf32>,
    return
  }
}

</mosaic_0001>

<bundles_post_ra>
// kernel: tpu_custom_call.1
= control target key start
LH: loop header
LB: loop body
LE: loop exit
PB: predicated region body
PF: predicated region fallthrough
CT: control target
= control target key end

     0   :  { %9 = vsyncpa [#allocation4], 0  ;;  %s1789_s0 = inlined_call_operand.vmem [shape: f32[64,16], index: 0, kind: input, shape index: {}]   ;;  %s1790_s1 = inlined_call_operand.vmem [shape: f32[16,256], index: 1, kind: input, shape index: {}]   ;;  %s1791_s2 = inlined_call_operand.hbm [shape: f32[64,256], index: 2, kind: input, shape index: {}]   ;;  %s1792_s3 = inlined_call_operand.vmem [shape: f32[1,256], index: 3, kind: input, shape index: {}]   ;;  %s1793_s4 = inlined_call_operand.hbm [shape: f32[8,128], index: 4, kind: output, shape index: {}]  }
   0x1   :  { %10 = vsyncpa [#allocation5], 0  ;;  %s1415_s15 = smov [#allocation3]  }
   0x2   :  { %s20_s16 = sshll.u32 %s1415_s15, 4  ;;  %s21_s16 = int_to_ptr.vmem [resolvable:$true] %s20_s16 }
   0x3   :  { %s1379_s17 = scalar_lea.vmem %s21_s16, 2048  ;;  %p1384_p1 = scmp.lt.s32.totalorder %s21_s16, %s21_s16 }
   0x4   :  { %p1380_p0 = scmp.ne.s32.totalorder %s21_s16, %s1379_s17  ;;  %p1385_p2 = scmp.lt.s32.totalorder %s1379_s17, %s1379_s17 }
   0x6   :  { %p1386_p3 = por %p1385_p2, %p1384_p1 }
   0x8   :  { %p1387_p4 = pnand %p1386_p3, %p1380_p0 }
   0xa   :  { %1390 = shalt.err (!%p1387_p4)
}
   0xb   :  { %s1416_s18 = smov 256   ;;  %s1417_s19 = smov 16  }
   0xc   :  { %26 = dma.hbm_to_vmem [thread:$0]  %s1791_s2, 2048, %s21_s16, [#allocation4], %s1416_s18, %s1416_s18, %s1417_s19  }
   0xd   :  { %1411 = dma.done.wait [#allocation4], 2048  }
   0xe   :  { %1412 = vsyncadd [#allocation4], 4294965248  ;;  %v1418_v0 = vmov 0.0   ;;  %v1451_v1 = vld [vmem:[#allocation3 + $0x78] sm:$0xff]  ;;  %v1453_v2 = vld [vmem:[#allocation3 + $0x70] sm:$0xff]  ;;  %vm56_vm0 = vcmask 130048   ;;  %v46_v22 = vlaneseq }
   0xf   :  { %145 = vmatprep.mubr.f32.mxu0 %v1418_v0  ;;  %299 = vmatprep.mubr.f32.mxu1 %v1418_v0  ;;  %v1455_v3 = vld [vmem:[#allocation3 + $0x68] sm:$0xff]  ;;  %v1458_v4 = vld [vmem:[#allocation3 + $0x60] sm:$0xff]  ;;  %v1461_v5 = vld [vmem:[#allocation3 + $0x58] sm:$0xff]  ;;  %s1419_s6 = smov 64   ;;  %vm231_vm2 = vcmask 523264  }
  0x10   :  { %251 = vmatprep.subr.mxu1 %v1451_v1  ;;  %v43_v6 = vld [vmem:[%s1790_s1 + $0x18] sm:$0xff]  ;;  %v1467_v7 = vld [vmem:[#allocation3 + $0x50] sm:$0xff]  ;;  %v1473_v9 = vld [vmem:[#allocation3 + $0x48] sm:$0xff]  ;;  %v47_v23 = vshrl.u32 %v46_v22, 7  ;;  %v1570_v52 = vand.u32 127, %v46_v22 }
  0x11   :  { %252 = vmatpush1.msra.mxu1 %v1453_v2  ;;  %109 = vmatprep.subr.mxu0 %v43_v6  ;;  %v42_v8 = vld [vmem:[%s1790_s1 + $0x10] sm:$0xff]  ;;  %v41_v10 = vld [vmem:[%s1790_s1 + $0x8] sm:$0xff]  ;;  %v40_v11 = vld [vmem:[%s1790_s1] sm:$0xff] }
  0x12   :  { %253 = vmatprep.subr.mxu1 %v1455_v3  ;;  %110 = vmatpush1.msra.mxu0 %v42_v8  ;;  %v1482_v12 = vld [vmem:[#allocation3 + $0x40] sm:$0xff]  ;;  %v1488_v14 = vld [vmem:[#allocation3 + $0x38] sm:$0xff]  ;;  %v1491_v15 = vld [vmem:[#allocation3 + $0x30] sm:$0xff]  ;;  %v48_v24 = vsub.s32 0, %v47_v23  ;;  %v52_v27 = vsub.s32 1, %v47_v23  ;;  %vm228_vm1 = vcmp.lt.s32.totalorder %v1570_v52, 32 }
  0x13   :  { %254 = vmatpush1.msra.mxu1 %v1458_v4  ;;  %111 = vmatprep.subr.mxu0 %v41_v10  ;;  %v32_v13 = vld [vmem:[%s1789_s0] sm:$0xff]  ;;  %v1495_v16 = vld [vmem:[#allocation3 + $0x28] sm:$0xff]  ;;  %v1503_v18 = vld [vmem:[#allocation3 + $0x18] sm:$0xff] }
  0x14   :  { %255 = vmatprep.subr.mxu1 %v1461_v5  ;;  %112 = vmatpush1.msra.mxu0 %v40_v11  ;;  %v1499_v17 = vld [vmem:[#allocation3 + $0x20] sm:$0xff]  ;;  %v1507_v19 = vld [vmem:[#allocation3 + $0x10] sm:$0xff]  ;;  %v1511_v20 = vld [vmem:[#allocation3 + $0x8] sm:$0xff] }
  0x15   :  { %256 = vmatpush1.msra.mxu1 %v1467_v7  ;;  %1223 = vmatmul.mubr.msk.f32.vlgmr.msra.gmra.mxu0 %vm56_vm0, %v32_v13  ;;  %v1515_v21 = vld [vmem:[#allocation3] sm:$0xff]  ;;  %v33_v44 = vld [vmem:[%s1789_s0 + $0x8] sm:$0xff] }
  0x16   :  { %257 = vmatprep.subr.mxu1 %v1473_v9  ;;  %151 = vmatprep.mubr.f32.mxu0 %v1418_v0  ;;  %v44_v25 = vld [vmem:[%s1792_s3] sm:$0x3] }
  0x17   :  { %258 = vmatpush1.msra.mxu1 %v1482_v12  ;;  %473 = vmatprep.subr.mxu0 %v1451_v1  ;;  %v1555_v26 = vrot.slane %v44_v25, %v48_v24  ;;  %v1558_v30 = vrot.slane %v44_v25, %v52_v27 }
  0x18   :  { %259 = vmatprep.subr.mxu1 %v1488_v14  ;;  %474 = vmatpush1.msra.mxu0 %v1453_v2 }
  0x19   :  { %260 = vmatpush1.msra.mxu1 %v1491_v15  ;;  %475 = vmatprep.subr.mxu0 %v1455_v3 }
  0x1a   :  { %261 = vmatprep.subr.mxu1 %v1495_v16  ;;  %476 = vmatpush1.msra.mxu0 %v1458_v4 }
  0x1b   :  { %262 = vmatpush1.msra.mxu1 %v1499_v17  ;;  %477 = vmatprep.subr.mxu0 %v1461_v5 }
  0x1c   :  { %263 = vmatprep.subr.mxu1 %v1503_v18  ;;  %478 = vmatpush1.msra.mxu0 %v1467_v7 }
  0x1d   :  { %264 = vmatpush1.msra.mxu1 %v1507_v19  ;;  %479 = vmatprep.subr.mxu0 %v1473_v9 }
  0x1e   :  { %265 = vmatprep.subr.mxu1 %v1511_v20  ;;  %480 = vmatpush1.msra.mxu0 %v1482_v12 }
  0x1f   :  { %266 = vmatpush1.msra.mxu1 %v1515_v21  ;;  %481 = vmatprep.subr.mxu0 %v1488_v14 }
  0x20   :  { %300 = vmatmul.mubr.f32.vlgmr.msra.gmra.mxu1 %v1418_v0  ;;  %363 = vmatprep.subr.mxu1 %v1451_v1 }
  0x21   :  { %364 = vmatpush1.msra.mxu1 %v1453_v2  ;;  %411 = vmatprep.mubr.f32.mxu1 %v1418_v0 }
  0x22   :  { %365 = vmatprep.subr.mxu1 %v1455_v3  ;;  %482 = vmatpush1.msra.mxu0 %v1491_v15 }
  0x23   :  { %366 = vmatpush1.msra.mxu1 %v1458_v4  ;;  %483 = vmatprep.subr.mxu0 %v1495_v16 }
  0x24   :  { %367 = vmatprep.subr.mxu1 %v1461_v5  ;;  %484 = vmatpush1.msra.mxu0 %v1499_v17 }
  0x25   :  { %368 = vmatpush1.msra.mxu1 %v1467_v7  ;;  %485 = vmatprep.subr.mxu0 %v1503_v18 }
  0x26   :  { %369 = vmatprep.subr.mxu1 %v1473_v9  ;;  %486 = vmatpush1.msra.mxu0 %v1507_v19 }
  0x27   :  { %370 = vmatpush1.msra.mxu1 %v1482_v12  ;;  %487 = vmatprep.subr.mxu0 %v1511_v20 }
  0x28   :  { %371 = vmatprep.subr.mxu1 %v1488_v14  ;;  %488 = vmatpush1.msra.mxu0 %v1515_v21 }
  0x29   :  { %372 = vmatpush1.msra.mxu1 %v1491_v15  ;;  %685 = vmatprep.subr.mxu0 %v1451_v1 }
  0x2a   :  { %373 = vmatprep.subr.mxu1 %v1495_v16  ;;  %1224 = vmatmul.mubr.msk.f32.gmra.mxu0 %vm56_vm0, %v33_v44 }
  0x2b   :  { %374 = vmatpush1.msra.mxu1 %v1499_v17  ;;  %157 = vmatprep.mubr.f32.mxu0 %v1418_v0 }
  0x2c   :  { %375 = vmatprep.subr.mxu1 %v1503_v18 }
  0x2d   :  { %376 = vmatpush1.msra.mxu1 %v1507_v19 }
  0x2e   :  { %377 = vmatprep.subr.mxu1 %v1511_v20 }
  0x2f   :  { %378 = vmatpush1.msra.mxu1 %v1515_v21 }
  0x30   :  { %579 = vmatprep.subr.mxu1 %v1451_v1 }
  0xd5   :  { %v147_v28 = vpop.f32.mrf.mxu0 }
  0xd6   :  { %v148_v29 = vadd.f32 %v147_v28, %v1555_v26  ;;  %v34_v28 = vld [vmem:[%s1789_s0 + $0x10] sm:$0xff] }
  0xd7   :  { %v149_v31 = vpop.f32.mrf.mxu0  ;;  %1225 = vmatmul.mubr.msk.f32.gmra.mxu0 %vm56_vm0, %v34_v28 }
  0xd8   :  { %v150_v33 = vadd.f32 %v149_v31, %v1558_v30  ;;  %163 = vmatprep.mubr.f32.mxu0 %v1418_v0  ;;  %v36_v31 = vld [vmem:[%s1789_s0 + $0x20] sm:$0xff] }
  0xe0   :  { %v301_v32 = vpop.f32.mrf.mxu1 }
  0xe1   :  { %v302_v34 = vadd.f32 %v301_v32, %v148_v29  ;;  %v35_v29 = vld [vmem:[%s1789_s0 + $0x18] sm:$0xff]  ;;  %v37_v32 = vld [vmem:[%s1789_s0 + $0x28] sm:$0xff] }
  0xe2   :  { %v303_v35 = vpop.f32.mrf.mxu1  ;;  %1226 = vmatmul.mubr.msk.f32.gmra.mxu0 %vm56_vm0, %v35_v29 }
  0xe3   :  { %v304_v36 = vadd.f32 %v303_v35, %v150_v33  ;;  %v1231_v38 = vmul.f32 -1.442695, %v302_v34  ;;  %169 = vmatprep.mubr.f32.mxu0 %v1418_v0  ;;  %v38_v33 = vld [vmem:[%s1789_s0 + $0x30] sm:$0xff]  ;;  %v39_v34 = vld [vmem:[%s1789_s0 + $0x38] sm:$0xff]  ;;  %s1420_s0 = smov [#allocation6]  }
  0xe4   :  { %s1214_s20 = sshll.u32 %s1420_s0, 4  ;;  %s1215_s20 = int_to_ptr.vmem [resolvable:$true] %s1214_s20 }
  0xe5   :  { %1263 = vtanh.f32 %v304_v36  ;;  %v1232_v49 = vmul.f32 -1.442695, %v304_v36  ;;  %s1391_s21 = scalar_lea.vmem %s1215_s20, 128  ;;  %p1396_p6 = scmp.lt.s32.totalorder %s1215_s20, %s1215_s20 }
  0xe6   :  { %1265 = vpow2.f32 %v1231_v38  ;;  %1227 = vmatmul.mubr.msk.f32.gmra.mxu0 %vm56_vm0, %v36_v31  ;;  %p1392_p5 = scmp.ne.s32.totalorder %s1215_s20, %s1391_s21  ;;  %p1397_p7 = scmp.lt.s32.totalorder %s1391_s21, %s1391_s21 }
  0xe7   :  { %175 = vmatprep.mubr.f32.mxu0 %v1418_v0 }
  0xe8   :  { %p1398_p8 = por %p1397_p7, %p1396_p6 }
  0xea   :  { %v153_v59 = vpop.f32.mrf.mxu0  ;;  %1228 = vmatmul.mubr.msk.f32.gmra.mxu0 %vm56_vm0, %v37_v32  ;;  %p1399_p9 = pnand %p1398_p8, %p1392_p5 }
  0xeb   :  { %v154_v60 = vadd.f32 %v153_v59, %v1555_v26  ;;  %181 = vmatprep.mubr.f32.mxu0 %v1418_v0 }
  0xec   :  { %v155_v61 = vpop.f32.mrf.mxu0 }
  0xed   :  { %v156_v63 = vadd.f32 %v155_v61, %v1558_v30 }
  0xee   :  { %1229 = vmatmul.mubr.msk.f32.gmra.mxu0 %vm56_vm0, %v38_v33 }
  0xef   :  { %187 = vmatprep.mubr.f32.mxu0 %v1418_v0 }
  0xf2   :  { %v1264_v37 = vpop.eup %1263  ;;  %1230 = vmatmul.mubr.msk.f32.gmra.mxu0 %vm56_vm0, %v39_v34 }
  0xf3   :  { %321 = vrot.lane.b32.xlu0 %v1264_v37, %s1419_s6  ;;  %v1266_v39 = vpop.eup %1265  ;;  %521 = vmatprep.mubr.f32.mxu0 %v1418_v0 }
  0xf4   :  { %v312_v40 = vadd.f32 1.0, %v1266_v39 }
  0xf6   :  { %1267 = vrcp.f32 %v312_v40 }
 0x103   :  { %v1268_v41 = vpop.eup %1267 }
 0x104   :  { %v319_v45 = vmul.f32 0.0, %v1268_v41 }
 0x165   :  { %v322_v42 = vpop.permute.xlu0 %321 }
 0x166   :  { %v324_v43 = vmul.f32 %v1268_v41, %v322_v42 }
 0x168   :  { %326 = vrot.lane.b32.xlu0 %v324_v43, %s1419_s6 }
 0x1da   :  { %v327_v46 = vpop.permute.xlu0 %326 }
 0x1db   :  { %v329_v47 = vadd.f32 %v327_v46, %v319_v45  ;;  %v159_v46 = vpop.f32.mrf.mxu0 }
 0x1dc   :  { %v160_v59 = vadd.f32 %v159_v46, %v1555_v26 }
 0x1dd   :  { %1269 = vtanh.f32 %v329_v47 }
 0x1de   :  { %1271 = vpow2.f32 %v1232_v49 }
 0x1ea   :  { %v1270_v48 = vpop.eup %1269 }
 0x1eb   :  { %332 = vrot.lane.b32.xlu1 %v1270_v48, %s1419_s6  ;;  %v1272_v50 = vpop.eup %1271 }
 0x1ec   :  { %v313_v51 = vadd.f32 1.0, %v1272_v50 }
 0x1ee   :  { %1273 = vrcp.f32 %v313_v51 }
 0x1ef   :  { %338 = vrot.lane.b32.xlu1 %v329_v47, %s1419_s6  ;;  %v161_v47 = vpop.f32.mrf.mxu0 }
 0x1f0   :  { %v162_v61 = vadd.f32 %v161_v47, %v1558_v30 }
 0x1f1   :  { %v165_v48 = vpop.f32.mrf.mxu0 }
 0x1f3   :  { %v167_v49 = vpop.f32.mrf.mxu0 }
 0x1f5   :  { %v1649_v50 = vpop.f32.mrf.mxu0 }
 0x1f7   :  { %v1651_v51 = vpop.f32.mrf.mxu0 }
 0x1fb   :  { %v1274_v53 = vpop.eup %1273 }
 0x25d   :  { %v333_v54 = vpop.permute.xlu1 %332 }
 0x25e   :  { %v335_v55 = vmul.f32 %v1274_v53, %v333_v54  ;;  %v1653_v53 = vpop.f32.mrf.mxu0 }
 0x260   :  { %v336_v56 = vsel %vm228_vm1, %v335_v55, 0.0  ;;  %v1655_v54 = vpop.f32.mrf.mxu0 }
 0x261   :  { %1233 = vmatmul.mubr.msk.f32.vlgmr.msra.gmra.mxu1 %vm231_vm2, %v336_v56  ;;  %v339_v57 = vpop.permute.xlu1 %338 }
 0x262   :  { %v341_v58 = vsel %vm228_vm1, %v339_v57, 0.0  ;;  %580 = vmatpush1.msra.mxu1 %v1453_v2  ;;  %627 = vmatprep.mubr.f32.mxu1 %v1418_v0  ;;  %v1657_v55 = vpop.f32.mrf.mxu0 }
 0x263   :  { %432 = vrot.lane.b32.xlu1 %v341_v58, %s1419_s6  ;;  %581 = vmatprep.subr.mxu1 %v1455_v3 }
 0x264   :  { %582 = vmatpush1.msra.mxu1 %v1458_v4  ;;  %v1659_v56 = vpop.f32.mrf.mxu0 }
 0x265   :  { %583 = vmatprep.subr.mxu1 %v1461_v5 }
 0x266   :  { %584 = vmatpush1.msra.mxu1 %v1467_v7  ;;  %v1661_v57 = vpop.f32.mrf.mxu0 }
 0x267   :  { %585 = vmatprep.subr.mxu1 %v1473_v9 }
 0x268   :  { %586 = vmatpush1.msra.mxu1 %v1482_v12  ;;  %v1663_v58 = vpop.f32.mrf.mxu0 }
 0x269   :  { %587 = vmatprep.subr.mxu1 %v1488_v14 }
 0x26a   :  { %588 = vmatpush1.msra.mxu1 %v1491_v15 }
 0x26b   :  { %589 = vmatprep.subr.mxu1 %v1495_v16 }
 0x26c   :  { %590 = vmatpush1.msra.mxu1 %v1499_v17 }
 0x26d   :  { %591 = vmatprep.subr.mxu1 %v1503_v18 }
 0x26e   :  { %592 = vmatpush1.msra.mxu1 %v1507_v19 }
 0x26f   :  { %593 = vmatprep.subr.mxu1 %v1511_v20 }
 0x270   :  { %594 = vmatpush1.msra.mxu1 %v1515_v21 }
 0x271   :  { %791 = vmatprep.subr.mxu1 %v1451_v1 }
 0x2d5   :  { %v433_v35 = vpop.permute.xlu1 %432 }
 0x321   :  { %v413_v62 = vpop.f32.mrf.mxu1 }
 0x322   :  { %v414_v6 = vadd.f32 %v413_v62, %v154_v60 }
 0x323   :  { %v415_v8 = vpop.f32.mrf.mxu1 }
 0x324   :  { %v416_v10 = vadd.f32 %v415_v8, %v156_v63  ;;  %v1234_v13 = vmul.f32 -1.442695, %v414_v6 }
 0x326   :  { %1275 = vtanh.f32 %v416_v10  ;;  %v1235_v40 = vmul.f32 -1.442695, %v416_v10 }
 0x327   :  { %1277 = vpow2.f32 %v1234_v13 }
 0x333   :  { %v1276_v11 = vpop.eup %1275 }
 0x334   :  { %437 = vrot.lane.b32.xlu0 %v1276_v11, %s1419_s6  ;;  %v1278_v22 = vpop.eup %1277 }
 0x335   :  { %v424_v23 = vadd.f32 1.0, %v1278_v22 }
 0x337   :  { %1279 = vrcp.f32 %v424_v23 }
 0x344   :  { %v1280_v24 = vpop.eup %1279 }
 0x345   :  { %v435_v36 = vmul.f32 %v1280_v24, %v433_v35 }
 0x3a6   :  { %v438_v25 = vpop.permute.xlu0 %437 }
 0x3a7   :  { %v440_v27 = vmul.f32 %v1280_v24, %v438_v25 }
 0x3a9   :  { %442 = vrot.lane.b32.xlu0 %v440_v27, %s1419_s6 }
 0x41b   :  { %v443_v37 = vpop.permute.xlu0 %442 }
 0x41c   :  { %v445_v38 = vadd.f32 %v443_v37, %v435_v36  ;;  %v166_v37 = vadd.f32 %v165_v48, %v1555_v26 }
 0x41e   :  { %1281 = vtanh.f32 %v445_v38 }
 0x41f   :  { %1283 = vpow2.f32 %v1235_v40 }
 0x42b   :  { %v1282_v39 = vpop.eup %1281 }
 0x42c   :  { %448 = vrot.lane.b32.xlu1 %v1282_v39, %s1419_s6  ;;  %v1284_v41 = vpop.eup %1283  ;;  %v168_v39 = vadd.f32 %v167_v49, %v1558_v30 }
 0x42d   :  { %v425_v42 = vadd.f32 1.0, %v1284_v41 }
 0x42f   :  { %1285 = vrcp.f32 %v425_v42 }
 0x43c   :  { %v1286_v43 = vpop.eup %1285 }
 0x49e   :  { %v449_v44 = vpop.permute.xlu1 %448 }
 0x49f   :  { %v451_v45 = vmul.f32 %v1286_v43, %v449_v44 }
 0x4a1   :  { %1236 = vmatmul.mubr.msk.f32.vlgmr.msra.gmra.mxu0 %vm231_vm2, %v451_v45 }
 0x4a2   :  { %686 = vmatpush1.msra.mxu0 %v1453_v2  ;;  %733 = vmatprep.mubr.f32.mxu0 %v1418_v0 }
 0x4a3   :  { %687 = vmatprep.subr.mxu0 %v1455_v3 }
 0x4a4   :  { %688 = vmatpush1.msra.mxu0 %v1458_v4 }
 0x4a5   :  { %689 = vmatprep.subr.mxu0 %v1461_v5 }
 0x4a6   :  { %690 = vmatpush1.msra.mxu0 %v1467_v7 }
 0x4a7   :  { %691 = vmatprep.subr.mxu0 %v1473_v9 }
 0x4a8   :  { %692 = vmatpush1.msra.mxu0 %v1482_v12 }
 0x4a9   :  { %693 = vmatprep.subr.mxu0 %v1488_v14 }
 0x4aa   :  { %694 = vmatpush1.msra.mxu0 %v1491_v15 }
 0x4ab   :  { %695 = vmatprep.subr.mxu0 %v1495_v16 }
 0x4ac   :  { %696 = vmatpush1.msra.mxu0 %v1499_v17 }
 0x4ad   :  { %697 = vmatprep.subr.mxu0 %v1503_v18 }
 0x4ae   :  { %698 = vmatpush1.msra.mxu0 %v1507_v19 }
 0x4af   :  { %699 = vmatprep.subr.mxu0 %v1511_v20 }
 0x4b0   :  { %700 = vmatpush1.msra.mxu0 %v1515_v21 }
 0x4b1   :  { %897 = vmatprep.subr.mxu0 %v1451_v1 }
 0x561   :  { %v523_v60 = vpop.f32.mrf.mxu0 }
 0x562   :  { %v524_v62 = vadd.f32 %v523_v60, %v160_v59 }
 0x563   :  { %v525_v63 = vpop.f32.mrf.mxu0 }
 0x564   :  { %v526_v6 = vadd.f32 %v525_v63, %v162_v61  ;;  %v1237_v10 = vmul.f32 -1.442695, %v524_v62 }
 0x566   :  { %1287 = vtanh.f32 %v526_v6  ;;  %v1238_v31 = vmul.f32 -1.442695, %v526_v6 }
 0x567   :  { %1289 = vpow2.f32 %v1237_v10 }
 0x573   :  { %v1288_v8 = vpop.eup %1287 }
 0x574   :  { %543 = vrot.lane.b32.xlu0 %v1288_v8, %s1419_s6  ;;  %v1290_v11 = vpop.eup %1289 }
 0x575   :  { %v534_v13 = vadd.f32 1.0, %v1290_v11 }
 0x577   :  { %1291 = vrcp.f32 %v534_v13 }
 0x584   :  { %v1292_v22 = vpop.eup %1291 }
 0x585   :  { %v541_v25 = vmul.f32 %v1292_v22, %v445_v38 }
 0x5e6   :  { %v544_v23 = vpop.permute.xlu0 %543 }
 0x5e7   :  { %v546_v24 = vmul.f32 %v1292_v22, %v544_v23  ;;  %v172_v22 = vadd.f32 %v1649_v50, %v1555_v26 }
 0x5e9   :  { %548 = vrot.lane.b32.xlu1 %v546_v24, %s1419_s6  ;;  %v174_v24 = vadd.f32 %v1651_v51, %v1558_v30 }
 0x65b   :  { %v549_v27 = vpop.permute.xlu1 %548 }
 0x65c   :  { %v551_v28 = vadd.f32 %v549_v27, %v541_v25 }
 0x65e   :  { %1293 = vtanh.f32 %v551_v28 }
 0x65f   :  { %1295 = vpow2.f32 %v1238_v31 }
 0x66b   :  { %v1294_v29 = vpop.eup %1293 }
 0x66c   :  { %554 = vrot.lane.b32.xlu0 %v1294_v29, %s1419_s6  ;;  %v1296_v32 = vpop.eup %1295 }
 0x66d   :  { %v535_v33 = vadd.f32 1.0, %v1296_v32 }
 0x66f   :  { %1297 = vrcp.f32 %v535_v33 }
 0x67c   :  { %v1298_v34 = vpop.eup %1297 }
 0x6de   :  { %v555_v35 = vpop.permute.xlu0 %554 }
 0x6df   :  { %v557_v36 = vmul.f32 %v1298_v34, %v555_v35 }
 0x6e1   :  { %1239 = vmatmul.mubr.msk.f32.vlgmr.msra.gmra.mxu1 %vm231_vm2, %v557_v36 }
 0x6e2   :  { %792 = vmatpush1.msra.mxu1 %v1453_v2  ;;  %839 = vmatprep.mubr.f32.mxu1 %v1418_v0 }
 0x6e3   :  { %793 = vmatprep.subr.mxu1 %v1455_v3 }
 0x6e4   :  { %794 = vmatpush1.msra.mxu1 %v1458_v4 }
 0x6e5   :  { %795 = vmatprep.subr.mxu1 %v1461_v5 }
 0x6e6   :  { %796 = vmatpush1.msra.mxu1 %v1467_v7 }
 0x6e7   :  { %797 = vmatprep.subr.mxu1 %v1473_v9 }
 0x6e8   :  { %798 = vmatpush1.msra.mxu1 %v1482_v12 }
 0x6e9   :  { %799 = vmatprep.subr.mxu1 %v1488_v14 }
 0x6ea   :  { %800 = vmatpush1.msra.mxu1 %v1491_v15 }
 0x6eb   :  { %801 = vmatprep.subr.mxu1 %v1495_v16 }
 0x6ec   :  { %802 = vmatpush1.msra.mxu1 %v1499_v17 }
 0x6ed   :  { %803 = vmatprep.subr.mxu1 %v1503_v18 }
 0x6ee   :  { %804 = vmatpush1.msra.mxu1 %v1507_v19 }
 0x6ef   :  { %805 = vmatprep.subr.mxu1 %v1511_v20 }
 0x6f0   :  { %806 = vmatpush1.msra.mxu1 %v1515_v21 }
 0x6f1   :  { %1003 = vmatprep.subr.mxu1 %v1451_v1 }
 0x7a1   :  { %v629_v38 = vpop.f32.mrf.mxu1 }
 0x7a2   :  { %v630_v40 = vadd.f32 %v629_v38, %v166_v37 }
 0x7a3   :  { %v631_v41 = vpop.f32.mrf.mxu1 }
 0x7a4   :  { %v632_v42 = vadd.f32 %v631_v41, %v168_v39  ;;  %v1240_v44 = vmul.f32 -1.442695, %v630_v40 }
 0x7a6   :  { %1299 = vtanh.f32 %v632_v42  ;;  %v1241_v63 = vmul.f32 -1.442695, %v632_v42 }
 0x7a7   :  { %1301 = vpow2.f32 %v1240_v44  ;;  %v178_v44 = vadd.f32 %v1653_v53, %v1555_v26 }
 0x7b3   :  { %v1300_v43 = vpop.eup %1299 }
 0x7b4   :  { %649 = vrot.lane.b32.xlu1 %v1300_v43, %s1419_s6  ;;  %v1302_v45 = vpop.eup %1301 }
 0x7b5   :  { %v640_v46 = vadd.f32 1.0, %v1302_v45 }
 0x7b7   :  { %1303 = vrcp.f32 %v640_v46  ;;  %v180_v46 = vadd.f32 %v1655_v54, %v1558_v30 }
 0x7c4   :  { %v1304_v47 = vpop.eup %1303 }
 0x7c5   :  { %v647_v48 = vmul.f32 %v1304_v47, %v551_v28 }
 0x826   :  { %v650_v59 = vpop.permute.xlu1 %649 }
 0x827   :  { %v652_v60 = vmul.f32 %v1304_v47, %v650_v59 }
 0x829   :  { %654 = vrot.lane.b32.xlu0 %v652_v60, %s1419_s6 }
 0x89b   :  { %v655_v61 = vpop.permute.xlu0 %654 }
 0x89c   :  { %v657_v49 = vadd.f32 %v655_v61, %v647_v48 }
 0x89e   :  { %1305 = vtanh.f32 %v657_v49 }
 0x89f   :  { %1307 = vpow2.f32 %v1241_v63 }
 0x8ab   :  { %v1306_v62 = vpop.eup %1305 }
 0x8ac   :  { %660 = vrot.lane.b32.xlu1 %v1306_v62, %s1419_s6  ;;  %v1308_v6 = vpop.eup %1307 }
 0x8ad   :  { %v641_v8 = vadd.f32 1.0, %v1308_v6 }
 0x8af   :  { %1309 = vrcp.f32 %v641_v8 }
 0x8bc   :  { %v1310_v10 = vpop.eup %1309 }
 0x91e   :  { %v661_v11 = vpop.permute.xlu1 %660 }
 0x91f   :  { %v663_v13 = vmul.f32 %v1310_v10, %v661_v11 }
 0x921   :  { %1242 = vmatmul.mubr.msk.f32.vlgmr.msra.gmra.mxu0 %vm231_vm2, %v663_v13 }
 0x922   :  { %898 = vmatpush1.msra.mxu0 %v1453_v2  ;;  %945 = vmatprep.mubr.f32.mxu0 %v1418_v0 }
 0x923   :  { %899 = vmatprep.subr.mxu0 %v1455_v3 }
 0x924   :  { %900 = vmatpush1.msra.mxu0 %v1458_v4 }
 0x925   :  { %901 = vmatprep.subr.mxu0 %v1461_v5 }
 0x926   :  { %902 = vmatpush1.msra.mxu0 %v1467_v7 }
 0x927   :  { %903 = vmatprep.subr.mxu0 %v1473_v9 }
 0x928   :  { %904 = vmatpush1.msra.mxu0 %v1482_v12 }
 0x929   :  { %905 = vmatprep.subr.mxu0 %v1488_v14 }
 0x92a   :  { %906 = vmatpush1.msra.mxu0 %v1491_v15 }
 0x92b   :  { %907 = vmatprep.subr.mxu0 %v1495_v16 }
 0x92c   :  { %908 = vmatpush1.msra.mxu0 %v1499_v17 }
 0x92d   :  { %909 = vmatprep.subr.mxu0 %v1503_v18 }
 0x92e   :  { %910 = vmatpush1.msra.mxu0 %v1507_v19 }
 0x92f   :  { %911 = vmatprep.subr.mxu0 %v1511_v20 }
 0x930   :  { %912 = vmatpush1.msra.mxu0 %v1515_v21 }
 0x931   :  { %1107 = vmatprep.subr.mxu0 %v1451_v1 }
 0x9e1   :  { %v735_v23 = vpop.f32.mrf.mxu0 }
 0x9e2   :  { %v736_v25 = vadd.f32 %v735_v23, %v172_v22 }
 0x9e3   :  { %v737_v27 = vpop.f32.mrf.mxu0 }
 0x9e4   :  { %v738_v28 = vadd.f32 %v737_v27, %v174_v24  ;;  %v1243_v31 = vmul.f32 -1.442695, %v736_v25 }
 0x9e6   :  { %1311 = vtanh.f32 %v738_v28  ;;  %v1244_v38 = vmul.f32 -1.442695, %v738_v28 }
 0x9e7   :  { %1313 = vpow2.f32 %v1243_v31 }
 0x9f3   :  { %v1312_v29 = vpop.eup %1311 }
 0x9f4   :  { %755 = vrot.lane.b32.xlu0 %v1312_v29, %s1419_s6  ;;  %v1314_v32 = vpop.eup %1313 }
 0x9f5   :  { %v746_v33 = vadd.f32 1.0, %v1314_v32 }
 0x9f7   :  { %1315 = vrcp.f32 %v746_v33 }
 0xa04   :  { %v1316_v1 = vpop.eup %1315 }
 0xa05   :  { %v753_v50 = vmul.f32 %v1316_v1, %v657_v49 }
 0xa66   :  { %v756_v34 = vpop.permute.xlu0 %755 }
 0xa67   :  { %v758_v35 = vmul.f32 %v1316_v1, %v756_v34  ;;  %v192_v34 = vadd.f32 %v1663_v58, %v1558_v30 }
 0xa69   :  { %760 = vrot.lane.b32.xlu1 %v758_v35, %s1419_s6 }
 0xadb   :  { %v761_v36 = vpop.permute.xlu1 %760 }
 0xadc   :  { %v763_v51 = vadd.f32 %v761_v36, %v753_v50 }
 0xade   :  { %1317 = vtanh.f32 %v763_v51 }
 0xadf   :  { %1319 = vpow2.f32 %v1244_v38 }
 0xaeb   :  { %v1318_v37 = vpop.eup %1317 }
 0xaec   :  { %766 = vrot.lane.b32.xlu0 %v1318_v37, %s1419_s6  ;;  %v1320_v39 = vpop.eup %1319 }
 0xaed   :  { %v747_v40 = vadd.f32 1.0, %v1320_v39 }
 0xaef   :  { %1321 = vrcp.f32 %v747_v40 }
 0xafc   :  { %v1322_v41 = vpop.eup %1321 }
 0xb5e   :  { %v767_v42 = vpop.permute.xlu0 %766 }
 0xb5f   :  { %v769_v43 = vmul.f32 %v1322_v41, %v767_v42 }
 0xb61   :  { %1245 = vmatmul.mubr.msk.f32.vlgmr.msra.gmra.mxu1 %vm231_vm2, %v769_v43 }
 0xb62   :  { %1004 = vmatpush1.msra.mxu1 %v1453_v2  ;;  %1051 = vmatprep.mubr.f32.mxu1 %v1418_v0 }
 0xb63   :  { %1005 = vmatprep.subr.mxu1 %v1455_v3 }
 0xb64   :  { %1006 = vmatpush1.msra.mxu1 %v1458_v4 }
 0xb65   :  { %1007 = vmatprep.subr.mxu1 %v1461_v5 }
 0xb66   :  { %1008 = vmatpush1.msra.mxu1 %v1467_v7 }
 0xb67   :  { %1009 = vmatprep.subr.mxu1 %v1473_v9 }
 0xb68   :  { %1010 = vmatpush1.msra.mxu1 %v1482_v12 }
 0xb69   :  { %1011 = vmatprep.subr.mxu1 %v1488_v14 }
 0xb6a   :  { %1012 = vmatpush1.msra.mxu1 %v1491_v15 }
 0xb6b   :  { %1013 = vmatprep.subr.mxu1 %v1495_v16 }
 0xb6c   :  { %1014 = vmatpush1.msra.mxu1 %v1499_v17 }
 0xb6d   :  { %1015 = vmatprep.subr.mxu1 %v1503_v18 }
 0xb6e   :  { %1016 = vmatpush1.msra.mxu1 %v1507_v19 }
 0xb6f   :  { %1017 = vmatprep.subr.mxu1 %v1511_v20 }
 0xb70   :  { %1018 = vmatpush1.msra.mxu1 %v1515_v21 }
 0xc21   :  { %v841_v45 = vpop.f32.mrf.mxu1 }
 0xc22   :  { %v842_v47 = vadd.f32 %v841_v45, %v178_v44 }
 0xc23   :  { %v843_v59 = vpop.f32.mrf.mxu1 }
 0xc24   :  { %v844_v60 = vadd.f32 %v843_v59, %v180_v46  ;;  %v1246_v61 = vmul.f32 -1.442695, %v842_v47 }
 0xc26   :  { %1323 = vtanh.f32 %v844_v60  ;;  %v1247_v13 = vmul.f32 -1.442695, %v844_v60 }
 0xc27   :  { %1325 = vpow2.f32 %v1246_v61 }
 0xc33   :  { %v1324_v48 = vpop.eup %1323 }
 0xc34   :  { %861 = vrot.lane.b32.xlu1 %v1324_v48, %s1419_s6  ;;  %v1326_v49 = vpop.eup %1325 }
 0xc35   :  { %v852_v62 = vadd.f32 1.0, %v1326_v49 }
 0xc37   :  { %1327 = vrcp.f32 %v852_v62 }
 0xc44   :  { %v1328_v63 = vpop.eup %1327 }
 0xc45   :  { %v859_v53 = vmul.f32 %v1328_v63, %v763_v51  ;;  %v190_v51 = vadd.f32 %v1661_v57, %v1555_v26 }
 0xca6   :  { %v862_v6 = vpop.permute.xlu1 %861 }
 0xca7   :  { %v864_v8 = vmul.f32 %v1328_v63, %v862_v6 }
 0xca9   :  { %866 = vrot.lane.b32.xlu0 %v864_v8, %s1419_s6 }
 0xd1b   :  { %v867_v10 = vpop.permute.xlu0 %866 }
 0xd1c   :  { %v869_v54 = vadd.f32 %v867_v10, %v859_v53 }
 0xd1e   :  { %1329 = vtanh.f32 %v869_v54 }
 0xd1f   :  { %1331 = vpow2.f32 %v1247_v13 }
 0xd2b   :  { %v1330_v11 = vpop.eup %1329 }
 0xd2c   :  { %872 = vrot.lane.b32.xlu1 %v1330_v11, %s1419_s6  ;;  %v1332_v22 = vpop.eup %1331 }
 0xd2d   :  { %v853_v23 = vadd.f32 1.0, %v1332_v22 }
 0xd2f   :  { %1333 = vrcp.f32 %v853_v23 }
 0xd3c   :  { %v1334_v24 = vpop.eup %1333 }
 0xd9e   :  { %v873_v25 = vpop.permute.xlu1 %872 }
 0xd9f   :  { %v875_v27 = vmul.f32 %v1334_v24, %v873_v25 }
 0xda1   :  { %1248 = vmatmul.mubr.msk.f32.vlgmr.msra.gmra.mxu0 %vm231_vm2, %v875_v27 }
 0xda2   :  { %1108 = vmatpush1.msra.mxu0 %v1453_v2  ;;  %1155 = vmatprep.mubr.f32.mxu0 %v1418_v0  ;;  %v184_v0 = vadd.f32 %v1657_v55, %v1555_v26 }
 0xda3   :  { %1109 = vmatprep.subr.mxu0 %v1455_v3  ;;  %v186_v3 = vadd.f32 %v1659_v56, %v1558_v30 }
 0xda4   :  { %1110 = vmatpush1.msra.mxu0 %v1458_v4 }
 0xda5   :  { %1111 = vmatprep.subr.mxu0 %v1461_v5 }
 0xda6   :  { %1112 = vmatpush1.msra.mxu0 %v1467_v7 }
 0xda7   :  { %1113 = vmatprep.subr.mxu0 %v1473_v9 }
 0xda8   :  { %1114 = vmatpush1.msra.mxu0 %v1482_v12 }
 0xda9   :  { %1115 = vmatprep.subr.mxu0 %v1488_v14 }
 0xdaa   :  { %1116 = vmatpush1.msra.mxu0 %v1491_v15 }
 0xdab   :  { %1117 = vmatprep.subr.mxu0 %v1495_v16 }
 0xdac   :  { %1118 = vmatpush1.msra.mxu0 %v1499_v17 }
 0xdad   :  { %1119 = vmatprep.subr.mxu0 %v1503_v18 }
 0xdae   :  { %1120 = vmatpush1.msra.mxu0 %v1507_v19 }
 0xdaf   :  { %1121 = vmatprep.subr.mxu0 %v1511_v20 }
 0xdb0   :  { %1122 = vmatpush1.msra.mxu0 %v1515_v21 }
 0xe61   :  { %v947_v2 = vpop.f32.mrf.mxu0 }
 0xe62   :  { %v948_v4 = vadd.f32 %v947_v2, %v184_v0 }
 0xe63   :  { %v949_v5 = vpop.f32.mrf.mxu0 }
 0xe64   :  { %v950_v7 = vadd.f32 %v949_v5, %v186_v3  ;;  %v1249_v12 = vmul.f32 -1.442695, %v948_v4 }
 0xe66   :  { %1335 = vtanh.f32 %v950_v7  ;;  %v1250_v56 = vmul.f32 -1.442695, %v950_v7 }
 0xe67   :  { %1337 = vpow2.f32 %v1249_v12 }
 0xe73   :  { %v1336_v9 = vpop.eup %1335 }
 0xe74   :  { %967 = vrot.lane.b32.xlu0 %v1336_v9, %s1419_s6  ;;  %v1338_v14 = vpop.eup %1337 }
 0xe75   :  { %v958_v15 = vadd.f32 1.0, %v1338_v14 }
 0xe77   :  { %1339 = vrcp.f32 %v958_v15 }
 0xe84   :  { %v1340_v16 = vpop.eup %1339 }
 0xe85   :  { %v965_v19 = vmul.f32 %v1340_v16, %v869_v54 }
 0xee6   :  { %v968_v17 = vpop.permute.xlu0 %967 }
 0xee7   :  { %v970_v18 = vmul.f32 %v1340_v16, %v968_v17 }
 0xee9   :  { %972 = vrot.lane.b32.xlu1 %v970_v18, %s1419_s6 }
 0xf5b   :  { %v973_v20 = vpop.permute.xlu1 %972 }
 0xf5c   :  { %v975_v21 = vadd.f32 %v973_v20, %v965_v19 }
 0xf5e   :  { %1341 = vtanh.f32 %v975_v21 }
 0xf5f   :  { %1343 = vpow2.f32 %v1250_v56 }
 0xf6b   :  { %v1342_v55 = vpop.eup %1341 }
 0xf6c   :  { %978 = vrot.lane.b32.xlu0 %v1342_v55, %s1419_s6  ;;  %v1344_v28 = vpop.eup %1343 }
 0xf6d   :  { %v959_v29 = vadd.f32 1.0, %v1344_v28 }
 0xf6f   :  { %1345 = vrcp.f32 %v959_v29 }
 0xf7c   :  { %v1346_v31 = vpop.eup %1345 }
 0xfde   :  { %v979_v32 = vpop.permute.xlu0 %978 }
 0xfdf   :  { %v981_v33 = vmul.f32 %v1346_v31, %v979_v32 }
 0xfe1   :  { %1251 = vmatmul.mubr.msk.f32.vlgmr.msra.gmra.mxu1 %vm231_vm2, %v981_v33 }
0x10a1   :  { %v1053_v1 = vpop.f32.mrf.mxu1 }
0x10a2   :  { %v1054_v37 = vadd.f32 %v1053_v1, %v190_v51 }
0x10a3   :  { %v1055_v35 = vpop.f32.mrf.mxu1 }
0x10a4   :  { %v1056_v50 = vadd.f32 %v1055_v35, %v192_v34  ;;  %v1252_v38 = vmul.f32 -1.442695, %v1054_v37 }
0x10a6   :  { %1347 = vtanh.f32 %v1056_v50  ;;  %v1253_v46 = vmul.f32 -1.442695, %v1056_v50 }
0x10a7   :  { %1349 = vpow2.f32 %v1252_v38 }
0x10b3   :  { %v1348_v36 = vpop.eup %1347 }
0x10b4   :  { %1073 = vrot.lane.b32.xlu1 %v1348_v36, %s1419_s6  ;;  %v1350_v39 = vpop.eup %1349 }
0x10b5   :  { %v1064_v40 = vadd.f32 1.0, %v1350_v39 }
0x10b7   :  { %1351 = vrcp.f32 %v1064_v40 }
0x10c4   :  { %v1352_v41 = vpop.eup %1351 }
0x10c5   :  { %v1071_v30 = vmul.f32 %v1352_v41, %v975_v21 }
0x1126   :  { %v1074_v42 = vpop.permute.xlu1 %1073 }
0x1127   :  { %v1076_v43 = vmul.f32 %v1352_v41, %v1074_v42 }
0x1129   :  { %1078 = vrot.lane.b32.xlu0 %v1076_v43, %s1419_s6 }
0x119b   :  { %v1079_v58 = vpop.permute.xlu0 %1078 }
0x119c   :  { %v1081_v44 = vadd.f32 %v1079_v58, %v1071_v30 }
0x119e   :  { %1353 = vtanh.f32 %v1081_v44 }
0x119f   :  { %1355 = vpow2.f32 %v1253_v46 }
0x11ab   :  { %v1354_v45 = vpop.eup %1353 }
0x11ac   :  { %1084 = vrot.lane.b32.xlu1 %v1354_v45, %s1419_s6  ;;  %v1356_v26 = vpop.eup %1355 }
0x11ad   :  { %v1065_v57 = vadd.f32 1.0, %v1356_v26 }
0x11af   :  { %1357 = vrcp.f32 %v1065_v57 }
0x11bc   :  { %v1358_v47 = vpop.eup %1357 }
0x121e   :  { %v1085_v59 = vpop.permute.xlu1 %1084 }
0x121f   :  { %v1087_v60 = vmul.f32 %v1358_v47, %v1085_v59 }
0x1221   :  { %1254 = vmatmul.mubr.msk.f32.vlgmr.msra.gmra.mxu0 %vm231_vm2, %v1087_v60 }
0x12e1   :  { %v1157_v48 = vpop.f32.mrf.mxu0 }
0x12e2   :  { %v1158_v63 = vadd.f32 %v1157_v48, %v190_v51 }
0x12e3   :  { %v1159_v61 = vpop.f32.mrf.mxu0 }
0x12e4   :  { %v1160_v49 = vadd.f32 %v1159_v61, %v192_v34  ;;  %v1255_v6 = vmul.f32 -1.442695, %v1158_v63 }
0x12e6   :  { %1359 = vtanh.f32 %v1160_v49  ;;  %v1256_v2 = vmul.f32 -1.442695, %v1160_v49 }
0x12e7   :  { %1361 = vpow2.f32 %v1255_v6 }
0x12f3   :  { %v1360_v62 = vpop.eup %1359 }
0x12f4   :  { %1177 = vrot.lane.b32.xlu0 %v1360_v62, %s1419_s6  ;;  %v1362_v8 = vpop.eup %1361 }
0x12f5   :  { %v1168_v53 = vadd.f32 1.0, %v1362_v8 }
0x12f7   :  { %1363 = vrcp.f32 %v1168_v53 }
0x12f8   :  { %1194 = vrot.lane.b32.xlu0 %v1081_v44, %s1419_s6 }
0x1304   :  { %v1364_v10 = vpop.eup %1363 }
0x1305   :  { %v1175_v13 = vmul.f32 %v1364_v10, %v1081_v44 }
0x1366   :  { %v1178_v54 = vpop.permute.xlu0 %1177 }
0x1367   :  { %v1180_v11 = vmul.f32 %v1364_v10, %v1178_v54 }
0x1369   :  { %1182 = vrot.lane.b32.xlu1 %v1180_v11, %s1419_s6 }
0x136a   :  { %v1195_v25 = vpop.permute.xlu0 %1194 }
0x13db   :  { %v1183_v22 = vpop.permute.xlu1 %1182 }
0x13dc   :  { %v1185_v23 = vadd.f32 %v1183_v22, %v1175_v13 }
0x13de   :  { %1365 = vtanh.f32 %v1185_v23  ;;  %1198 = vrot.lane.b32.xlu1 %v1185_v23, %s1419_s6 }
0x13df   :  { %1367 = vpow2.f32 %v1256_v2 }
0x13eb   :  { %v1366_v24 = vpop.eup %1365 }
0x13ec   :  { %1188 = vrot.lane.b32.xlu0 %v1366_v24, %s1419_s6  ;;  %v1368_v3 = vpop.eup %1367 }
0x13ed   :  { %v1169_v4 = vadd.f32 1.0, %v1368_v3 }
0x13ef   :  { %1369 = vrcp.f32 %v1169_v4 }
0x13fc   :  { %v1370_v7 = vpop.eup %1369 }
0x1450   :  { %v1199_v27 = vpop.permute.xlu1 %1198 }
0x1451   :  { %v1201_v0 = vsel %vm228_vm1, %v1195_v25, %v1199_v27 }
0x1452   :  { %1203 = vrot.lane.b32.xlu1 %v1201_v0, %s1419_s6 }
0x145e   :  { %v1189_v5 = vpop.permute.xlu0 %1188 }
0x145f   :  { %v1191_v9 = vmul.f32 %v1370_v7, %v1189_v5 }
0x1461   :  { %v1192_v14 = vsel %vm228_vm1, %v1087_v60, %v1191_v9 }
0x14c4   :  { %v1204_v12 = vpop.permute.xlu1 %1203 }
0x14c5   :  { %v1206_v15 = vsel %vm231_vm2, %v1192_v14, %v1204_v12 }
0x14c6   :  { %1207 = vst [vmem:[#allocation6] sm:$0xff] %v1206_v15 }
0x14c7   :  { %1402 = shalt.err (!%p1399_p9)
}
0x14c8   :  { %1217 = dma.vmem_to_hbm [thread:$0]  %s1215_s20, 128, %s1793_s4, [#allocation5]  }
0x14c9   :  { %1413 = dma.done.wait [#allocation5], 128  }
0x14ca   :  { %1414 = vsyncadd [#allocation5], 4294967168 }
0x14cb   :  { %1221 = vsyncpa [#allocation4], 1 }
0x14cc   :  { %1222 = vsyncpa [#allocation5], 1 }

</bundles_post_ra>
